<compile_context>
chip_gen: v7x
topology: tpu7x:2x2x1
jax: 0.10.0
libtpu: 0.0.40
codegen_flags: <defaults>
</compile_context>

<pallas_src>
import functools

import jax
import jax.numpy as jnp
import numpy as np
from jax import lax
from jax.experimental import pallas as pl
from jax.experimental.pallas import tpu as pltpu


def _softplus(x):
    # numerically stable softplus, elementwise (VPU + EUP only)
    return jnp.maximum(x, 0.0) + jnp.log(1.0 + jnp.exp(-jnp.abs(x)))


def _lgamma(x):
    """log Gamma(x) for x > 0 via recurrence shift + Stirling series.

    lgamma(x) = lgamma(x + 8) - log(x*(x+1)*...*(x+7)); Stirling at z = x + 8.
    The shift product is formed with VPU multiplies (ample VALU slack) and costs
    ONE EUP log instead of 8; the series reciprocal uses the approximate EUP
    path (error << the 1/(12*8) magnitude of the series).  Absolute error is
    ~1e-6..1e-5 for moderate a, b — well inside the test tolerance.
    """
    p = x
    z = x
    for _ in range(7):        # unrolled VPU multiplies
        z = z + 1.0
        p = p * z
    z = z + 1.0               # z = x + 8 >= 8
    shift_log = jnp.log(p)

    zinv = pl.reciprocal(z, approx=True)
    zinv2 = zinv * zinv
    series = zinv * (1.0 / 12.0
                     + zinv2 * (-1.0 / 360.0
                                + zinv2 * (1.0 / 1260.0
                                           + zinv2 * (-1.0 / 1680.0))))
    half_log_2pi = 0.5 * float(np.log(2.0 * np.pi))
    return (z - 0.5) * jnp.log(z) - z + half_log_2pi + series - shift_log


# dot_general dimension numbers for  A @ B^T  (contract the last dim of both)
_DN_ABT = (((1,), (1,)), ((), ()))


def beta_policy_kernel(action_dim,
                       state_ref, action_ref,
                       w1_ref, b1_ref, w2_ref, b2_ref, w3_ref, b3_ref,
                       m_ref, c_ref, out_ref):
    # state_ref: (tile_T, S), action_ref: (tile_T, A)  — natural layout.
    # Weights in PyTorch (out, in) layout; biases / constants as (rows, 1) columns.
    # W @ X^T on the MXU puts T on the lane axis for everything downstream.

    # --- MLP_Beta forward ---
    x = jnp.tanh(
        lax.dot_general(w1_ref[...], state_ref[...], _DN_ABT,
                        preferred_element_type=jnp.float32) + b1_ref[...])
    x = jnp.tanh(
        jnp.dot(w2_ref[...], x, preferred_element_type=jnp.float32) + b2_ref[...])
    # fused fc3 head: ab = [a ; b]  -> (2A, tile_T), softplus at full vreg fill
    ab = _softplus(
        jnp.dot(w3_ref[...], x, preferred_element_type=jnp.float32) + b3_ref[...])

    # --- Beta(a, b).log_prob(action / h), summed over the action dim ---
    # y_stack = [y ; 1 - y] with y = action / h, built by one tiny matmul:
    #   m = [diag(1/h); -diag(1/h)]  (2A, A),  c = [0;...;0;1;...;1]  (2A, 1)
    # NOTE: 1-y is computed in f32; for y extremely close to 1 a log1p-style
    # formulation would be marginally more accurate (not needed at 2e-3 tol).
    y_stack = lax.dot_general(m_ref[...], action_ref[...], _DN_ABT,
                              preferred_element_type=jnp.float32) + c_ref[...]
    logs = jnp.log(y_stack)                      # (2A, tile_T): one full-fill EUP pass

    lg_ab = _lgamma(ab)                          # (2A, tile_T), 8-sublane aligned
    apb = ab[:action_dim] + ab[action_dim:]      # (A, tile_T): one sublane shuffle
    lg_apb = _lgamma(apb)

    # rows 0..A-1:  (a-1)*log(y)   - lgamma(a)
    # rows A..2A-1: (b-1)*log(1-y) - lgamma(b)
    term = (ab - 1.0) * logs - lg_ab

    # reduce over the action dim (sublanes, XLU) -> lane-dense (1, tile_T) row
    out_ref[...] = (jnp.sum(term, axis=0, keepdims=True)
                    + jnp.sum(lg_apb, axis=0, keepdims=True))


def beta_policy_evaluate_action(state, action, params, h, action_dim, tile_T=2048):
    """state: (T, state_dim), action: (T, action_dim) -> log_prob (T,)

    params are in PyTorch layout: w (out, in), b (out,).
    """
    w1, b1, w2, b2, w3, b3 = params
    T, state_dim = state.shape
    f1 = w1.shape[0]
    f2 = w2.shape[0]
    out3 = w3.shape[0]                      # = 2 * action_dim

    b1c = b1.reshape(f1, 1).astype(jnp.float32)
    b2c = b2.reshape(f2, 1).astype(jnp.float32)
    b3c = b3.reshape(out3, 1).astype(jnp.float32)

    inv_h = (1.0 / h).astype(jnp.float32)
    m_top = jnp.diag(inv_h)
    m_stack = jnp.concatenate([m_top, -m_top], axis=0)                  # (2A, A)
    c_stack = jnp.concatenate([jnp.zeros((action_dim, 1), jnp.float32),
                               jnp.ones((action_dim, 1), jnp.float32)], axis=0)

    # Tile selection: multiple of 128 (lane-dense output), as large as reasonable
    # (per-step overhead ~0.35us), but at least 2 grid steps when there is enough
    # work so v7x's two TensorCores both get tiles.  VMEM use is a few MiB even
    # at tile 2048, far under v7x's 64 MiB as well as v5e/v6e's 128 MiB.
    pad128 = ((T + 127) // 128) * 128
    tile = min(int(tile_T), pad128)
    if pad128 >= 256 and pad128 // tile < 2:
        tile = max(128, (pad128 // 2) // 128 * 128)
    pad_T = ((T + tile - 1) // tile) * tile
    grid = (pad_T // tile,)

    # No transpose pass; pad along T only when needed.  Padded actions are filled
    # with h/2 so y stays strictly inside (0,1) on the discarded columns.
    if pad_T != T:
        state_p = jnp.concatenate(
            [state, jnp.zeros((pad_T - T, state_dim), jnp.float32)], axis=0)
        action_fill = jnp.broadcast_to(0.5 * h.astype(jnp.float32),
                                       (pad_T - T, action_dim))
        action_p = jnp.concatenate([action, action_fill], axis=0)
    else:
        state_p, action_p = state, action

    def tiled_spec(ncols):
        return pl.BlockSpec((tile, ncols), lambda i: (i, 0))

    def resident_spec(shape):
        return pl.BlockSpec(shape, lambda i: (0, 0))

    # advisory cost hint: the kernel is EUP (transcendental) bound, not FLOP bound
    flops = 2 * pad_T * (state_dim * f1 + f1 * f2 + f2 * out3 + action_dim * out3)
    transcendentals = pad_T * (f1 + f2            # tanh
                               + 2 * out3         # softplus (exp + log)
                               + out3             # log([y ; 1-y])
                               + 3 * out3         # lgamma(ab): 2 logs + 1 rcp
                               + 3 * action_dim)  # lgamma(a+b)
    bytes_accessed = 4 * (pad_T * (state_dim + action_dim + 1)
                          + int(w1.size) + int(w2.size) + int(w3.size)
                          + int(b1.size) + int(b2.size) + int(b3.size)
                          + int(m_stack.size) + int(c_stack.size))

    out = pl.pallas_call(
        functools.partial(beta_policy_kernel, action_dim),
        out_shape=jax.ShapeDtypeStruct((1, pad_T), jnp.float32),
        grid=grid,
        in_specs=[
            tiled_spec(state_dim),                 # state  (tile, S)
            tiled_spec(action_dim),                # action (tile, A)
            resident_spec((f1, state_dim)),        # w1
            resident_spec((f1, 1)),                # b1
            resident_spec((f2, f1)),               # w2
            resident_spec((f2, 1)),                # b2
            resident_spec((out3, f2)),             # w3 (fused a/b head)
            resident_spec((out3, 1)),              # b3
            resident_spec((out3, action_dim)),     # m_stack = [diag(1/h); -diag(1/h)]
            resident_spec((out3, 1)),              # c_stack = [0; 1]
        ],
        out_specs=pl.BlockSpec((1, tile), lambda i: (0, i)),
        compiler_params=pltpu.CompilerParams(
            dimension_semantics=("parallel",),
            vmem_limit_bytes=32 * 1024 * 1024),
        cost_estimate=pl.CostEstimate(flops=int(flops),
                                      transcendentals=int(transcendentals),
                                      bytes_accessed=int(bytes_accessed)),
    )(state_p, action_p, w1, b1c, w2, b2c, w3, b3c, m_stack, c_stack)
    return out[0, :T]


# ---------------- deterministic parameter init (matches shapes of __init__) ---


def _orthogonal(key, out_dim, in_dim, gain):
    """Orthogonal init a la nn.init.orthogonal_, PyTorch (out, in) layout."""
    a = jax.random.normal(key, (out_dim, in_dim), dtype=jnp.float32)
    transpose = out_dim < in_dim
    if transpose:
        a = a.T
    q, r = jnp.linalg.qr(a)
    q = q * jnp.sign(jnp.diag(r))
    if transpose:
        q = q.T
    return gain * q


def make_params(key, state_dim, fc1_dim, fc2_dim, action_dim):
    gain = float(np.sqrt(2.0))
    k1, k2, k3 = jax.random.split(key, 3)
    out3 = 2 * action_dim
    w1 = _orthogonal(k1, fc1_dim, state_dim, gain)
    w2 = _orthogonal(k2, fc2_dim, fc1_dim, gain)
    w3 = _orthogonal(k3, out3, fc2_dim, gain)
    b1 = jnp.zeros((fc1_dim,), jnp.float32)
    b2 = jnp.zeros((fc2_dim,), jnp.float32)
    b3 = jnp.zeros((out3,), jnp.float32)
    return (w1, b1, w2, b2, w3, b3)


def reference(state, action, params, h, action_dim):
    """Pure-JAX reference (uses lax.lgamma) for a correctness check."""
    w1, b1, w2, b2, w3, b3 = params
    x = jnp.tanh(state @ w1.T + b1)
    x = jnp.tanh(x @ w2.T + b2)
    ab = jax.nn.softplus(x @ w3.T + b3)
    a = ab[:, :action_dim]
    b = ab[:, action_dim:]
    y = action / h
    lg = jax.lax.lgamma
    logp = ((a - 1.0) * jnp.log(y) + (b - 1.0) * jnp.log(1.0 - y)
            + lg(a + b) - lg(a) - lg(b))
    return jnp.sum(logp, axis=1)


if __name__ == "__main__":
    # Small shapes consistent with the module: T = batch of timesteps.
    state_dim = 16
    fc1_dim = 32
    fc2_dim = 32
    action_dim = 4

    key = jax.random.PRNGKey(0)
    k_params, k_state, k_action = jax.random.split(key, 3)

    params = make_params(k_params, state_dim, fc1_dim, fc2_dim, action_dim)
    h = 2.5 * jnp.ones((action_dim,), jnp.float32)   # self.h

    # T=8 exercises the single-tile + padded-tail path, T=300 the multi-tile path.
    for T in (8, 300):
        ks, ka = jax.random.split(jax.random.fold_in(k_state, T))
        state = jax.random.normal(ks, (T, state_dim), dtype=jnp.float32)
        # actions must lie strictly inside (0, h) for Beta.log_prob to be finite
        action = jax.random.uniform(ka, (T, action_dim), dtype=jnp.float32,
                                    minval=0.05, maxval=0.95) * h

        log_prob = beta_policy_evaluate_action(state, action, params, h, action_dim)
        log_prob = jax.block_until_ready(log_prob)

        ref = reference(state, action, params, h, action_dim)
        np.testing.assert_allclose(np.asarray(log_prob), np.asarray(ref),
                                   rtol=2e-3, atol=2e-3)

    print("KERNEL_OK")
</pallas_src>

<mosaic_0001>
module attributes {stable_mosaic.version = 11 : i64} {
  func.func @beta_policy_kernel(%arg0: i32, %arg1: memref<128x16xf32, #tpu.memory_space<vmem>>, %arg2: memref<128x4xf32, #tpu.memory_space<vmem>>, %arg3: memref<32x16xf32, #tpu.memory_space<vmem>>, %arg4: memref<32x1xf32, #tpu.memory_space<vmem>>, %arg5: memref<32x32xf32, #tpu.memory_space<vmem>>, %arg6: memref<32x1xf32, #tpu.memory_space<vmem>>, %arg7: memref<8x32xf32, #tpu.memory_space<vmem>>, %arg8: memref<8x1xf32, #tpu.memory_space<vmem>>, %arg9: memref<8x4xf32, #tpu.memory_space<vmem>>, %arg10: memref<8x1xf32, #tpu.memory_space<vmem>>, %arg11: memref<1x128xf32, #tpu.memory_space<vmem>>) attributes {dimension_semantics = [#tpu.dimension_semantics<parallel>], iteration_bounds = array<i64: 1>, scalar_prefetch = 0 : i64, scratch_operands = 0 : i64, tpu.core_type = #tpu.core_type<tc>, window_params = [{transform_indices = @transform_0, window_bounds = array<i64: 128, 16>}, {transform_indices = @transform_1, window_bounds = array<i64: 128, 4>}, {pipeline_mode = #tpu.pipeline_mode<synchronous>, transform_indices = @transform_2, window_bounds = array<i64: 32, 16>}, {pipeline_mode = #tpu.pipeline_mode<synchronous>, transform_indices = @transform_3, window_bounds = array<i64: 32, 1>}, {pipeline_mode = #tpu.pipeline_mode<synchronous>, transform_indices = @transform_4, window_bounds = array<i64: 32, 32>}, {pipeline_mode = #tpu.pipeline_mode<synchronous>, transform_indices = @transform_5, window_bounds = array<i64: 32, 1>}, {pipeline_mode = #tpu.pipeline_mode<synchronous>, transform_indices = @transform_6, window_bounds = array<i64: 8, 32>}, {pipeline_mode = #tpu.pipeline_mode<synchronous>, transform_indices = @transform_7, window_bounds = array<i64: 8, 1>}, {pipeline_mode = #tpu.pipeline_mode<synchronous>, transform_indices = @transform_8, window_bounds = array<i64: 8, 4>}, {pipeline_mode = #tpu.pipeline_mode<synchronous>, transform_indices = @transform_9, window_bounds = array<i64: 8, 1>}, {transform_indices = @transform_10, window_bounds = array<i64: 1, 128>}]} {
    %c0 = arith.constant 0 : index
    %c0_0 = arith.constant 0 : index
    %0 = vector.load %arg3[%c0, %c0_0] : memref<32x16xf32, #tpu.memory_space<vmem>>, vector<32x16xf32>
    %c0_1 = arith.constant 0 : index
    %c0_2 = arith.constant 0 : index
    %1 = vector.load %arg1[%c0_1, %c0_2] : memref<128x16xf32, #tpu.memory_space<vmem>>, vector<128x16xf32>
    %cst = arith.constant dense<0.000000e+00> : vector<32x128xf32>
    %2 = tpu.matmul %0, %1, %cst {dimension_numbers = #tpu.dot_dimension_numbers<[1], [1], [0], [0], [0, 0, 1, 0], [], []>} : vector<32x16xf32>, vector<128x16xf32>, vector<32x128xf32> -> vector<32x128xf32>
    %c0_3 = arith.constant 0 : index
    %c0_4 = arith.constant 0 : index
    %3 = vector.load %arg4[%c0_3, %c0_4] : memref<32x1xf32, #tpu.memory_space<vmem>>, vector<32x1xf32>
    %4 = vector.broadcast %3 : vector<32x1xf32> to vector<32x128xf32>
    %5 = arith.addf %2, %4 : vector<32x128xf32>
    %6 = math.tanh %5 : vector<32x128xf32>
    %c0_5 = arith.constant 0 : index
    %c0_6 = arith.constant 0 : index
    %7 = vector.load %arg5[%c0_5, %c0_6] : memref<32x32xf32, #tpu.memory_space<vmem>>, vector<32x32xf32>
    %cst_7 = arith.constant dense<0.000000e+00> : vector<32x128xf32>
    %8 = tpu.matmul %7, %6, %cst_7 {dimension_numbers = #tpu.dot_dimension_numbers<[1], [0], [0], [1], [0, 0, 1, 1], [], []>} : vector<32x32xf32>, vector<32x128xf32>, vector<32x128xf32> -> vector<32x128xf32>
    %c0_8 = arith.constant 0 : index
    %c0_9 = arith.constant 0 : index
    %9 = vector.load %arg6[%c0_8, %c0_9] : memref<32x1xf32, #tpu.memory_space<vmem>>, vector<32x1xf32>
    %10 = vector.broadcast %9 : vector<32x1xf32> to vector<32x128xf32>
    %11 = arith.addf %8, %10 : vector<32x128xf32>
    %12 = math.tanh %11 : vector<32x128xf32>
    %c0_10 = arith.constant 0 : index
    %c0_11 = arith.constant 0 : index
    %13 = vector.load %arg7[%c0_10, %c0_11] : memref<8x32xf32, #tpu.memory_space<vmem>>, vector<8x32xf32>
    %cst_12 = arith.constant dense<0.000000e+00> : vector<8x128xf32>
    %14 = tpu.matmul %13, %12, %cst_12 {dimension_numbers = #tpu.dot_dimension_numbers<[1], [0], [0], [1], [0, 0, 1, 1], [], []>} : vector<8x32xf32>, vector<32x128xf32>, vector<8x128xf32> -> vector<8x128xf32>
    %c0_13 = arith.constant 0 : index
    %c0_14 = arith.constant 0 : index
    %15 = vector.load %arg8[%c0_13, %c0_14] : memref<8x1xf32, #tpu.memory_space<vmem>>, vector<8x1xf32>
    %16 = vector.broadcast %15 : vector<8x1xf32> to vector<8x128xf32>
    %17 = arith.addf %14, %16 : vector<8x128xf32>
    %cst_15 = arith.constant 0.000000e+00 : f32
    %18 = vector.broadcast %cst_15 : f32 to vector<8x128xf32>
    %19 = arith.maximumf %17, %18 : vector<8x128xf32>
    %20 = math.absf %17 : vector<8x128xf32>
    %cst_16 = arith.constant 0.000000e+00 : f32
    %21 = vector.broadcast %cst_16 : f32 to vector<8x128xf32>
    %22 = arith.subf %21, %20 : vector<8x128xf32>
    %23 = math.exp %22 : vector<8x128xf32>
    %cst_17 = arith.constant 1.000000e+00 : f32
    %24 = vector.broadcast %cst_17 : f32 to vector<8x128xf32>
    %25 = arith.addf %24, %23 : vector<8x128xf32>
    %26 = math.log %25 : vector<8x128xf32>
    %27 = arith.addf %19, %26 : vector<8x128xf32>
    %c0_18 = arith.constant 0 : index
    %c0_19 = arith.constant 0 : index
    %28 = vector.load %arg9[%c0_18, %c0_19] : memref<8x4xf32, #tpu.memory_space<vmem>>, vector<8x4xf32>
    %c0_20 = arith.constant 0 : index
    %c0_21 = arith.constant 0 : index
    %29 = vector.load %arg2[%c0_20, %c0_21] : memref<128x4xf32, #tpu.memory_space<vmem>>, vector<128x4xf32>
    %cst_22 = arith.constant dense<0.000000e+00> : vector<8x128xf32>
    %30 = tpu.matmul %28, %29, %cst_22 {dimension_numbers = #tpu.dot_dimension_numbers<[1], [1], [0], [0], [0, 0, 1, 0], [], []>} : vector<8x4xf32>, vector<128x4xf32>, vector<8x128xf32> -> vector<8x128xf32>
    %c0_23 = arith.constant 0 : index
    %c0_24 = arith.constant 0 : index
    %31 = vector.load %arg10[%c0_23, %c0_24] : memref<8x1xf32, #tpu.memory_space<vmem>>, vector<8x1xf32>
    %32 = vector.broadcast %31 : vector<8x1xf32> to vector<8x128xf32>
    %33 = arith.addf %30, %32 : vector<8x128xf32>
    %34 = math.log %33 : vector<8x128xf32>
    %cst_25 = arith.constant 1.000000e+00 : f32
    %35 = vector.broadcast %cst_25 : f32 to vector<8x128xf32>
    %36 = arith.addf %27, %35 : vector<8x128xf32>
    %37 = arith.mulf %27, %36 : vector<8x128xf32>
    %cst_26 = arith.constant 1.000000e+00 : f32
    %38 = vector.broadcast %cst_26 : f32 to vector<8x128xf32>
    %39 = arith.addf %36, %38 : vector<8x128xf32>
    %40 = arith.mulf %37, %39 : vector<8x128xf32>
    %cst_27 = arith.constant 1.000000e+00 : f32
    %41 = vector.broadcast %cst_27 : f32 to vector<8x128xf32>
    %42 = arith.addf %39, %41 : vector<8x128xf32>
    %43 = arith.mulf %40, %42 : vector<8x128xf32>
    %cst_28 = arith.constant 1.000000e+00 : f32
    %44 = vector.broadcast %cst_28 : f32 to vector<8x128xf32>
    %45 = arith.addf %42, %44 : vector<8x128xf32>
    %46 = arith.mulf %43, %45 : vector<8x128xf32>
    %cst_29 = arith.constant 1.000000e+00 : f32
    %47 = vector.broadcast %cst_29 : f32 to vector<8x128xf32>
    %48 = arith.addf %45, %47 : vector<8x128xf32>
    %49 = arith.mulf %46, %48 : vector<8x128xf32>
    %cst_30 = arith.constant 1.000000e+00 : f32
    %50 = vector.broadcast %cst_30 : f32 to vector<8x128xf32>
    %51 = arith.addf %48, %50 : vector<8x128xf32>
    %52 = arith.mulf %49, %51 : vector<8x128xf32>
    %cst_31 = arith.constant 1.000000e+00 : f32
    %53 = vector.broadcast %cst_31 : f32 to vector<8x128xf32>
    %54 = arith.addf %51, %53 : vector<8x128xf32>
    %55 = arith.mulf %52, %54 : vector<8x128xf32>
    %cst_32 = arith.constant 1.000000e+00 : f32
    %56 = vector.broadcast %cst_32 : f32 to vector<8x128xf32>
    %57 = arith.addf %54, %56 : vector<8x128xf32>
    %58 = math.log %55 : vector<8x128xf32>
    %59 = tpu.reciprocal %57 {approx = true} : vector<8x128xf32> -> vector<8x128xf32>
    %60 = arith.mulf %59, %59 : vector<8x128xf32>
    %cst_33 = arith.constant -5.95238118E-4 : f32
    %61 = vector.broadcast %cst_33 : f32 to vector<8x128xf32>
    %62 = arith.mulf %60, %61 : vector<8x128xf32>
    %cst_34 = arith.constant 7.93650805E-4 : f32
    %63 = vector.broadcast %cst_34 : f32 to vector<8x128xf32>
    %64 = arith.addf %63, %62 : vector<8x128xf32>
    %65 = arith.mulf %60, %64 : vector<8x128xf32>
    %cst_35 = arith.constant -0.00277777785 : f32
    %66 = vector.broadcast %cst_35 : f32 to vector<8x128xf32>
    %67 = arith.addf %66, %65 : vector<8x128xf32>
    %68 = arith.mulf %60, %67 : vector<8x128xf32>
    %cst_36 = arith.constant 0.0833333358 : f32
    %69 = vector.broadcast %cst_36 : f32 to vector<8x128xf32>
    %70 = arith.addf %69, %68 : vector<8x128xf32>
    %71 = arith.mulf %59, %70 : vector<8x128xf32>
    %cst_37 = arith.constant 5.000000e-01 : f32
    %72 = vector.broadcast %cst_37 : f32 to vector<8x128xf32>
    %73 = arith.subf %57, %72 : vector<8x128xf32>
    %74 = math.log %57 : vector<8x128xf32>
    %75 = arith.mulf %73, %74 : vector<8x128xf32>
    %76 = arith.subf %75, %57 : vector<8x128xf32>
    %cst_38 = arith.constant 0.918938517 : f32
    %77 = vector.broadcast %cst_38 : f32 to vector<8x128xf32>
    %78 = arith.addf %76, %77 : vector<8x128xf32>
    %79 = arith.addf %78, %71 : vector<8x128xf32>
    %80 = arith.subf %79, %58 : vector<8x128xf32>
    %81 = vector.extract_strided_slice %27 {offsets = [0, 0], sizes = [4, 128], strides = [1, 1]} : vector<8x128xf32> to vector<4x128xf32>
    %82 = vector.extract_strided_slice %27 {offsets = [4, 0], sizes = [4, 128], strides = [1, 1]} : vector<8x128xf32> to vector<4x128xf32>
    %83 = arith.addf %81, %82 : vector<4x128xf32>
    %cst_39 = arith.constant 1.000000e+00 : f32
    %84 = vector.broadcast %cst_39 : f32 to vector<4x128xf32>
    %85 = arith.addf %83, %84 : vector<4x128xf32>
    %86 = arith.mulf %83, %85 : vector<4x128xf32>
    %cst_40 = arith.constant 1.000000e+00 : f32
    %87 = vector.broadcast %cst_40 : f32 to vector<4x128xf32>
    %88 = arith.addf %85, %87 : vector<4x128xf32>
    %89 = arith.mulf %86, %88 : vector<4x128xf32>
    %cst_41 = arith.constant 1.000000e+00 : f32
    %90 = vector.broadcast %cst_41 : f32 to vector<4x128xf32>
    %91 = arith.addf %88, %90 : vector<4x128xf32>
    %92 = arith.mulf %89, %91 : vector<4x128xf32>
    %cst_42 = arith.constant 1.000000e+00 : f32
    %93 = vector.broadcast %cst_42 : f32 to vector<4x128xf32>
    %94 = arith.addf %91, %93 : vector<4x128xf32>
    %95 = arith.mulf %92, %94 : vector<4x128xf32>
    %cst_43 = arith.constant 1.000000e+00 : f32
    %96 = vector.broadcast %cst_43 : f32 to vector<4x128xf32>
    %97 = arith.addf %94, %96 : vector<4x128xf32>
    %98 = arith.mulf %95, %97 : vector<4x128xf32>
    %cst_44 = arith.constant 1.000000e+00 : f32
    %99 = vector.broadcast %cst_44 : f32 to vector<4x128xf32>
    %100 = arith.addf %97, %99 : vector<4x128xf32>
    %101 = arith.mulf %98, %100 : vector<4x128xf32>
    %cst_45 = arith.constant 1.000000e+00 : f32
    %102 = vector.broadcast %cst_45 : f32 to vector<4x128xf32>
    %103 = arith.addf %100, %102 : vector<4x128xf32>
    %104 = arith.mulf %101, %103 : vector<4x128xf32>
    %cst_46 = arith.constant 1.000000e+00 : f32
    %105 = vector.broadcast %cst_46 : f32 to vector<4x128xf32>
    %106 = arith.addf %103, %105 : vector<4x128xf32>
    %107 = math.log %104 : vector<4x128xf32>
    %108 = tpu.reciprocal %106 {approx = true} : vector<4x128xf32> -> vector<4x128xf32>
    %109 = arith.mulf %108, %108 : vector<4x128xf32>
    %cst_47 = arith.constant -5.95238118E-4 : f32
    %110 = vector.broadcast %cst_47 : f32 to vector<4x128xf32>
    %111 = arith.mulf %109, %110 : vector<4x128xf32>
    %cst_48 = arith.constant 7.93650805E-4 : f32
    %112 = vector.broadcast %cst_48 : f32 to vector<4x128xf32>
    %113 = arith.addf %112, %111 : vector<4x128xf32>
    %114 = arith.mulf %109, %113 : vector<4x128xf32>
    %cst_49 = arith.constant -0.00277777785 : f32
    %115 = vector.broadcast %cst_49 : f32 to vector<4x128xf32>
    %116 = arith.addf %115, %114 : vector<4x128xf32>
    %117 = arith.mulf %109, %116 : vector<4x128xf32>
    %cst_50 = arith.constant 0.0833333358 : f32
    %118 = vector.broadcast %cst_50 : f32 to vector<4x128xf32>
    %119 = arith.addf %118, %117 : vector<4x128xf32>
    %120 = arith.mulf %108, %119 : vector<4x128xf32>
    %cst_51 = arith.constant 5.000000e-01 : f32
    %121 = vector.broadcast %cst_51 : f32 to vector<4x128xf32>
    %122 = arith.subf %106, %121 : vector<4x128xf32>
    %123 = math.log %106 : vector<4x128xf32>
    %124 = arith.mulf %122, %123 : vector<4x128xf32>
    %125 = arith.subf %124, %106 : vector<4x128xf32>
    %cst_52 = arith.constant 0.918938517 : f32
    %126 = vector.broadcast %cst_52 : f32 to vector<4x128xf32>
    %127 = arith.addf %125, %126 : vector<4x128xf32>
    %128 = arith.addf %127, %120 : vector<4x128xf32>
    %129 = arith.subf %128, %107 : vector<4x128xf32>
    %cst_53 = arith.constant 1.000000e+00 : f32
    %130 = vector.broadcast %cst_53 : f32 to vector<8x128xf32>
    %131 = arith.subf %27, %130 : vector<8x128xf32>
    %132 = arith.mulf %131, %34 : vector<8x128xf32>
    %133 = arith.subf %132, %80 : vector<8x128xf32>
    %cst_54 = arith.constant dense<0.000000e+00> : vector<128xf32>
    %134 = vector.multi_reduction <add>, %133, %cst_54 [0] : vector<8x128xf32> to vector<128xf32>
    %135 = vector.shape_cast %134 : vector<128xf32> to vector<1x128xf32>
    %cst_55 = arith.constant dense<0.000000e+00> : vector<128xf32>
    %136 = vector.multi_reduction <add>, %129, %cst_55 [0] : vector<4x128xf32> to vector<128xf32>
    %137 = vector.shape_cast %136 : vector<128xf32> to vector<1x128xf32>
    %138 = arith.addf %135, %137 : vector<1x128xf32>
    %c0_56 = arith.constant 0 : index
    %c0_57 = arith.constant 0 : index
    %139 = vector.load %arg11[%c0_56, %c0_57] : memref<1x128xf32, #tpu.memory_space<vmem>>, vector<1x128xf32>
    tpu.vector_store %arg11[%c0_56, %c0_57], %138 {strides = array<i32>} : memref<1x128xf32, #tpu.memory_space<vmem>>, vector<1x128xf32>,
    return
  }
  func.func @transform_0(%arg0: i32) -> (i32, i32) {
    %c0_i32 = arith.constant 0 : i32
    %c0_i32_0 = arith.constant 0 : i32
    return %arg0, %c0_i32 : i32, i32
  }
  func.func @transform_1(%arg0: i32) -> (i32, i32) {
    %c0_i32 = arith.constant 0 : i32
    %c0_i32_0 = arith.constant 0 : i32
    return %arg0, %c0_i32 : i32, i32
  }
  func.func @transform_2(%arg0: i32) -> (i32, i32) {
    %c0_i32 = arith.constant 0 : i32
    %c0_i32_0 = arith.constant 0 : i32
    %c0_i32_1 = arith.constant 0 : i32
    return %c0_i32, %c0_i32_0 : i32, i32
  }
  func.func @transform_3(%arg0: i32) -> (i32, i32) {
    %c0_i32 = arith.constant 0 : i32
    %c0_i32_0 = arith.constant 0 : i32
    %c0_i32_1 = arith.constant 0 : i32
    return %c0_i32, %c0_i32_0 : i32, i32
  }
  func.func @transform_4(%arg0: i32) -> (i32, i32) {
    %c0_i32 = arith.constant 0 : i32
    %c0_i32_0 = arith.constant 0 : i32
    %c0_i32_1 = arith.constant 0 : i32
    return %c0_i32, %c0_i32_0 : i32, i32
  }
  func.func @transform_5(%arg0: i32) -> (i32, i32) {
    %c0_i32 = arith.constant 0 : i32
    %c0_i32_0 = arith.constant 0 : i32
    %c0_i32_1 = arith.constant 0 : i32
    return %c0_i32, %c0_i32_0 : i32, i32
  }
  func.func @transform_6(%arg0: i32) -> (i32, i32) {
    %c0_i32 = arith.constant 0 : i32
    %c0_i32_0 = arith.constant 0 : i32
    %c0_i32_1 = arith.constant 0 : i32
    return %c0_i32, %c0_i32_0 : i32, i32
  }
  func.func @transform_7(%arg0: i32) -> (i32, i32) {
    %c0_i32 = arith.constant 0 : i32
    %c0_i32_0 = arith.constant 0 : i32
    %c0_i32_1 = arith.constant 0 : i32
    return %c0_i32, %c0_i32_0 : i32, i32
  }
  func.func @transform_8(%arg0: i32) -> (i32, i32) {
    %c0_i32 = arith.constant 0 : i32
    %c0_i32_0 = arith.constant 0 : i32
    %c0_i32_1 = arith.constant 0 : i32
    return %c0_i32, %c0_i32_0 : i32, i32
  }
  func.func @transform_9(%arg0: i32) -> (i32, i32) {
    %c0_i32 = arith.constant 0 : i32
    %c0_i32_0 = arith.constant 0 : i32
    %c0_i32_1 = arith.constant 0 : i32
    return %c0_i32, %c0_i32_0 : i32, i32
  }
  func.func @transform_10(%arg0: i32) -> (i32, i32) {
    %c0_i32 = arith.constant 0 : i32
    %c0_i32_0 = arith.constant 0 : i32
    return %c0_i32, %arg0 : i32, i32
  }
}

</mosaic_0001>

<bundles_post_ra>
// kernel: tpu_custom_call.1
= control target key start
LH: loop header
LB: loop body
LE: loop exit
PB: predicated region body
PF: predicated region fallthrough
CT: control target
= control target key end

     0   :  { %vm80_vm0 = vcmask 130048   ;;  %v1053_v6 = vmov 0   ;;  %s1366_s0 = inlined_call_operand.vmem [shape: f32[128,16], index: 0, kind: input, shape index: {}]   ;;  %s1367_s1 = inlined_call_operand.vmem [shape: f32[128,4], index: 1, kind: input, shape index: {}]   ;;  %s1368_s2 = inlined_call_operand.vmem [shape: f32[32,16], index: 2, kind: input, shape index: {}]   ;;  %s1369_s3 = inlined_call_operand.vmem [shape: f32[32,1], index: 3, kind: input, shape index: {}]   ;;  %s1370_s4 = inlined_call_operand.vmem [shape: f32[32,32], index: 4, kind: input, shape index: {}]   ;;  %s1371_s5 = inlined_call_operand.vmem [shape: f32[32,1], index: 5, kind: input, shape index: {}]   ;;  %s1372_s6 = inlined_call_operand.vmem [shape: f32[8,32], index: 6, kind: input, shape index: {}]   ;;  %s1373_s7 = inlined_call_operand.vmem [shape: f32[8,1], index: 7, kind: input, shape index: {}]   ;;  %s1374_s8 = inlined_call_operand.vmem [shape: f32[8,4], index: 8, kind: input, shape index: {}]   ;;  %s1375_s9 = inlined_call_operand.vmem [shape: f32[8,1], index: 9, kind: input, shape index: {}]   ;;  %s1376_s10 = inlined_call_operand.hbm [shape: f32[1,128], index: 10, kind: output, shape index: {}]  }
   0x1   :  { %v40_v0 = vld [vmem:[%s1366_s0] sm:$0xff]  ;;  %v41_v1 = vld [vmem:[%s1366_s0 + $0x8] sm:$0xff]  ;;  %v42_v2 = vld [vmem:[%s1366_s0 + $0x10] sm:$0xff]  ;;  %993 = vset.pattern.permute.xlu0 %v1053_v6  ;;  %994 = vset.pattern.permute.xlu1 %v1053_v6 }
   0x2   :  { %v894_v3 = vpack.c.bf16 %v41_v1, %v40_v0  ;;  %vm1124_vm1 = vmpackc.low %vm80_vm0, %vm80_vm0  ;;  %v43_v5 = vld [vmem:[%s1366_s0 + $0x18] sm:$0xff]  ;;  %v36_v8 = vld [vmem:[%s1368_s2] sm:$0xff] }
   0x3   :  { %v900_v7 = vpack.c.bf16 %v43_v5, %v42_v2  ;;  %v44_v9 = vld [vmem:[%s1366_s0 + $0x20] sm:$0xff]  ;;  %v45_v10 = vld [vmem:[%s1366_s0 + $0x28] sm:$0xff]  ;;  %828 = vmatprep.mubr.msk.f32.mxu0 %vm80_vm0, %v36_v8  ;;  %v58_v12 = vld [vmem:[%s1369_s3 + $0x10] sm:$0xff] }
   0x4   :  { %896 = vmatprep.subr.msk.bf16.mxu0 %vm1124_vm1, %v894_v3  ;;  %v56_v11 = vld [vmem:[%s1369_s3] sm:$0xff]  ;;  %72 = vperm.xlu1 %994, %v58_v12   ;;  %v906_v13 = vpack.c.bf16 %v45_v10, %v44_v9  ;;  %v57_v14 = vld [vmem:[%s1369_s3 + $0x8] sm:$0xff]  ;;  %v59_v15 = vld [vmem:[%s1369_s3 + $0x18] sm:$0xff] }
   0x5   :  { %899 = vmatpush3.bf16.xpose.msk.msra.mxu0 %vm1124_vm1, %v894_v3  ;;  %62 = vperm.xlu0 %993, %v56_v11  }
   0x6   :  { %902 = vmatprep.subr.msk.bf16.mxu0 %vm1124_vm1, %v900_v7 }
   0x7   :  { %15 = vsyncpa [#allocation3], 0  ;;  %v234_v16 = vld [vmem:[%s1371_s5] sm:$0xff]  ;;  %v46_v17 = vld [vmem:[%s1366_s0 + $0x30] sm:$0xff]  ;;  %vm258_vm2 = vcmask 261120   ;;  %v1054_v41 = vmov 0.0|0.0  }
   0x8   :  { %77 = vperm.xlu1 %994, %v59_v15   ;;  %v47_v18 = vld [vmem:[%s1366_s0 + $0x38] sm:$0xff]  ;;  %v235_v19 = vld [vmem:[%s1371_s5 + $0x8] sm:$0xff]  ;;  %v236_v21 = vld [vmem:[%s1371_s5 + $0x10] sm:$0xff]  ;;  %vm1055_vm3 = vmmov 0   ;;  %v1056_v42 = vmov 0.0   ;;  %vm472_vm4 = vcmask 31744  }
   0x9   :  { %67 = vperm.xlu0 %993, %v57_v14   ;;  %v912_v20 = vpack.c.bf16 %v47_v18, %v46_v17  ;;  %v237_v22 = vld [vmem:[%s1371_s5 + $0x18] sm:$0xff]  ;;  %v361_v23 = vld [vmem:[%s1373_s7] sm:$0xff]  ;;  %v49_v25 = vld [vmem:[%s1366_s0 + $0x48] sm:$0xff]  ;;  %vm677_vm6 = vcmask 1043456  }
   0xa   :  { %v48_v24 = vld [vmem:[%s1366_s0 + $0x40] sm:$0xff]  ;;  %v50_v28 = vld [vmem:[%s1366_s0 + $0x50] sm:$0xff]  ;;  %v51_v29 = vld [vmem:[%s1366_s0 + $0x58] sm:$0xff] }
   0xb   :  { %v466_v26 = vld [vmem:[%s1375_s9] sm:$0xff]  ;;  %v918_v27 = vpack.c.bf16 %v49_v25, %v48_v24  ;;  %v924_v30 = vpack.c.bf16 %v51_v29, %v50_v28  ;;  %v53_v32 = vld [vmem:[%s1366_s0 + $0x68] sm:$0xff]  ;;  %v54_v34 = vld [vmem:[%s1366_s0 + $0x70] sm:$0xff] }
   0xc   :  { %245 = vperm.xlu1 %994, %v235_v19   ;;  %v52_v31 = vld [vmem:[%s1366_s0 + $0x60] sm:$0xff]  ;;  %v55_v35 = vld [vmem:[%s1366_s0 + $0x78] sm:$0xff]  ;;  %v37_v37 = vld [vmem:[%s1368_s2 + $0x8] sm:$0xff] }
   0xd   :  { %905 = vmatpush3.bf16.xpose.msk.msra.mxu0 %vm1124_vm1, %v900_v7  ;;  %240 = vperm.xlu0 %993, %v234_v16   ;;  %v930_v33 = vpack.c.bf16 %v53_v32, %v52_v31  ;;  %v936_v36 = vpack.c.bf16 %v55_v35, %v54_v34  ;;  %v38_v38 = vld [vmem:[%s1368_s2 + $0x10] sm:$0xff]  ;;  %v39_v39 = vld [vmem:[%s1368_s2 + $0x18] sm:$0xff]  ;;  %v230_v40 = vld [vmem:[%s1370_s4] sm:$0xff] }
   0xe   :  { %908 = vmatprep.subr.msk.bf16.mxu0 %vm1124_vm1, %v906_v13  ;;  %842 = vmatprep.mubr.msk.f32.mxu1 %vm258_vm2, %v230_v40  ;;  %v231_v61 = vld [vmem:[%s1370_s4 + $0x8] sm:$0xff]  ;;  %v232_v62 = vld [vmem:[%s1370_s4 + $0x10] sm:$0xff]  ;;  %v450_v63 = vld [vmem:[%s1367_s1] sm:$0xff] }
   0xf   :  { %v451_v0 = vld [vmem:[%s1367_s1 + $0x8] sm:$0xff]  ;;  %v233_v1 = vld [vmem:[%s1370_s4 + $0x18] sm:$0xff]  ;;  %vm1271_vm5 = vmpackc.low %vm472_vm4, %vm472_vm4 }
  0x10   :  { %255 = vperm.xlu1 %994, %v237_v22   ;;  %v957_v2 = vpack.c.bf16 %v451_v0, %v450_v63  ;;  %v452_v4 = vld [vmem:[%s1367_s1 + $0x10] sm:$0xff]  ;;  %v453_v5 = vld [vmem:[%s1367_s1 + $0x18] sm:$0xff]  ;;  %v454_v7 = vld [vmem:[%s1367_s1 + $0x20] sm:$0xff] }
  0x11   :  { %250 = vperm.xlu0 %993, %v236_v21   ;;  %v961_v6 = vpack.c.bf16 %v453_v5, %v452_v4  ;;  %v455_v8 = vld [vmem:[%s1367_s1 + $0x28] sm:$0xff]  ;;  %v456_v10 = vld [vmem:[%s1367_s1 + $0x30] sm:$0xff]  ;;  %v457_v11 = vld [vmem:[%s1367_s1 + $0x38] sm:$0xff] }
  0x12   :  { %v965_v9 = vpack.c.bf16 %v455_v8, %v454_v7  ;;  %v969_v12 = vpack.c.bf16 %v457_v11, %v456_v10  ;;  %v459_v14 = vld [vmem:[%s1367_s1 + $0x48] sm:$0xff]  ;;  %v460_v16 = vld [vmem:[%s1367_s1 + $0x50] sm:$0xff]  ;;  %v461_v17 = vld [vmem:[%s1367_s1 + $0x58] sm:$0xff] }
  0x13   :  { %v977_v18 = vpack.c.bf16 %v461_v17, %v460_v16  ;;  %v462_v19 = vld [vmem:[%s1367_s1 + $0x60] sm:$0xff]  ;;  %v464_v22 = vld [vmem:[%s1367_s1 + $0x70] sm:$0xff] }
  0x14   :  { %469 = vperm.xlu1 %994, %v466_v26   ;;  %v449_v25 = vld [vmem:[%s1374_s8] sm:$0xff] }
  0x15   :  { %911 = vmatpush3.bf16.xpose.msk.msra.mxu0 %vm1124_vm1, %v906_v13  ;;  %364 = vperm.xlu0 %993, %v361_v23   ;;  %v458_v13 = vld [vmem:[%s1367_s1 + $0x40] sm:$0xff]  ;;  %v465_v23 = vld [vmem:[%s1367_s1 + $0x78] sm:$0xff] }
  0x16   :  { %914 = vmatprep.subr.msk.bf16.mxu0 %vm1124_vm1, %v912_v20  ;;  %v973_v15 = vpack.c.bf16 %v459_v14, %v458_v13  ;;  %v985_v24 = vpack.c.bf16 %v465_v23, %v464_v22 }
  0x1d   :  { %917 = vmatpush3.bf16.xpose.msk.msra.mxu0 %vm1124_vm1, %v912_v20  ;;  %v463_v20 = vld [vmem:[%s1367_s1 + $0x68] sm:$0xff] }
  0x1e   :  { %920 = vmatprep.subr.msk.bf16.mxu0 %vm1124_vm1, %v918_v27  ;;  %v981_v21 = vpack.c.bf16 %v463_v20, %v462_v19 }
  0x25   :  { %923 = vmatpush3.bf16.xpose.msk.msra.mxu0 %vm1124_vm1, %v918_v27 }
  0x26   :  { %926 = vmatprep.subr.msk.bf16.mxu0 %vm1124_vm1, %v924_v30 }
  0x2d   :  { %929 = vmatpush3.bf16.xpose.msk.msra.mxu0 %vm1124_vm1, %v924_v30 }
  0x2e   :  { %932 = vmatprep.subr.msk.bf16.mxu0 %vm1124_vm1, %v930_v33 }
  0x35   :  { %935 = vmatpush3.bf16.xpose.msk.msra.mxu0 %vm1124_vm1, %v930_v33 }
  0x36   :  { %938 = vmatprep.subr.msk.bf16.mxu0 %vm1124_vm1, %v936_v36 }
  0x3d   :  { %941 = vmatpush3.bf16.xpose.msk.msra.mxu0 %vm1124_vm1, %v936_v36 }
  0x3e   :  { %950 = vmatprep.subr.bf16.mxu0 %v1054_v41 }
  0x44   :  { %829 = vmatmul.mubr.msk.f32.vlgmr.msra.gmra.mrb[0].mxu0 %vm80_vm0, %v37_v37 }
  0x45   :  { %831 = vmatprep.mubr.msk.f32.mxu0 %vm80_vm0, %v38_v38 }
  0x48   :  { %832 = vmatmul.mubr.msk.f32.gmra.mrb[2].mxu0 %vm80_vm0, %v39_v39 }
  0x49   :  { %856 = vmatprep.mubr.msk.f32.mxu0 %vm1055_vm3, %v1056_v42 }
  0x83   :  { %v73_v44 = vpop.permute.xlu1 %72 }
  0x84   :  { %v63_v43 = vpop.permute.xlu0 %62 }
  0x87   :  { %v78_v50 = vpop.permute.xlu1 %77 }
  0x88   :  { %v68_v45 = vpop.permute.xlu0 %67 }
  0x8b   :  { %v246_v26 = vpop.permute.xlu1 %245 }
  0x8c   :  { %v241_v27 = vpop.permute.xlu0 %240 }
  0x8f   :  { %v256_v32 = vpop.permute.xlu1 %255 }
  0x90   :  { %v251_v34 = vpop.permute.xlu0 %250 }
 0x117   :  { %v830_v46 = vpop.f32.mrb[0].mxu0 }
 0x118   :  { %v213_v47 = vadd.f32 %v830_v46, %v68_v45  ;;  %v207_v48 = vpop.f32.mrb[1].mxu0  ;;  %v360_v45 = vld [vmem:[%s1372_s6] sm:$0xff]  ;;  %s1057_s6 = smov [#allocation2]  }
 0x119   :  { %v208_v49 = vadd.f32 %v207_v48, %v63_v43  ;;  %v365_v48 = vpop.permute.xlu0 %364  ;;  %s693_s17 = sshll.u32 %s1057_s6, 4  ;;  %s694_s17 = int_to_ptr.vmem [resolvable:$true] %s693_s17 }
 0x11a   :  { %995 = vtanh.f32 %v213_v47  ;;  %s1029_s18 = scalar_lea.vmem %s694_s17, 16  ;;  %s1033_s19 = scalar_lea.vmem %s694_s17, 32 }
 0x11b   :  { %997 = vtanh.f32 %v208_v49  ;;  %v833_v51 = vpop.f32.mrb[2].mxu0  ;;  %p1030_p0 = scmp.ne.s32.totalorder %s694_s17, %s1029_s18  ;;  %p1034_p1 = scmp.lt.s32.totalorder %s694_s17, %s694_s17 }
 0x11c   :  { %v223_v52 = vadd.f32 %v833_v51, %v78_v50  ;;  %v217_v53 = vpop.f32.mrb[3].mxu0  ;;  %p1035_p2 = scmp.lt.s32.totalorder %s1033_s19, %s1029_s18 }
 0x11d   :  { %v218_v54 = vadd.f32 %v217_v53, %v73_v44 }
 0x11e   :  { %999 = vtanh.f32 %v223_v52  ;;  %p1036_p3 = por %p1035_p2, %p1034_p1 }
 0x11f   :  { %1001 = vtanh.f32 %v218_v54 }
 0x120   :  { %p1037_p4 = pnand %p1036_p3, %p1030_p0 }
 0x124   :  { %v996_v55 = vpop.eup %995 }
 0x125   :  { %v998_v56 = vpop.eup %997 }
 0x126   :  { %v942_v57 = vpack.c.bf16 %v996_v55, %v998_v56 }
 0x128   :  { %v1000_v58 = vpop.eup %999  ;;  %943 = vmatprep.subr.bf16.mxu1 %v942_v57 }
 0x129   :  { %v1002_v59 = vpop.eup %1001  ;;  %945 = vmatpush3.bf16.msra.mxu1 %v942_v57 }
 0x12a   :  { %v946_v60 = vpack.c.bf16 %v1000_v58, %v1002_v59 }
 0x12c   :  { %947 = vmatprep.subr.bf16.mxu1 %v946_v60 }
 0x12d   :  { %949 = vmatpush3.bf16.msra.mxu1 %v946_v60 }
 0x12e   :  { %956 = vmatprep.subr.bf16.mxu1 %v1054_v41 }
 0x130   :  { %843 = vmatmul.mubr.msk.f32.vlgmr.msra.gmra.mrb[0].mxu1 %vm258_vm2, %v231_v61 }
 0x131   :  { %845 = vmatprep.mubr.msk.f32.mxu1 %vm258_vm2, %v232_v62 }
 0x134   :  { %846 = vmatmul.mubr.msk.f32.gmra.mrb[2].mxu1 %vm258_vm2, %v233_v1 }
 0x135   :  { %891 = vmatprep.mubr.msk.f32.mxu1 %vm1055_vm3, %v1056_v42 }
 0x136   :  { %959 = vmatpush3.bf16.xpose.msk.msra.mxu1 %vm1271_vm5, %v957_v2 }
 0x137   :  { %960 = vmatprep.subr.bf16.mxu1 %v1054_v41 }
 0x13e   :  { %963 = vmatpush3.bf16.xpose.msk.msra.mxu1 %vm1271_vm5, %v961_v6 }
 0x13f   :  { %964 = vmatprep.subr.bf16.mxu1 %v1054_v41 }
 0x146   :  { %967 = vmatpush3.bf16.xpose.msk.msra.mxu1 %vm1271_vm5, %v965_v9 }
 0x147   :  { %968 = vmatprep.subr.bf16.mxu1 %v1054_v41 }
 0x14e   :  { %971 = vmatpush3.bf16.xpose.msk.msra.mxu1 %vm1271_vm5, %v969_v12 }
 0x14f   :  { %972 = vmatprep.subr.bf16.mxu1 %v1054_v41 }
 0x156   :  { %975 = vmatpush3.bf16.xpose.msk.msra.mxu1 %vm1271_vm5, %v973_v15 }
 0x157   :  { %976 = vmatprep.subr.bf16.mxu1 %v1054_v41 }
 0x15e   :  { %979 = vmatpush3.bf16.xpose.msk.msra.mxu1 %vm1271_vm5, %v977_v18 }
 0x15f   :  { %980 = vmatprep.subr.bf16.mxu1 %v1054_v41 }
 0x166   :  { %983 = vmatpush3.bf16.xpose.msk.msra.mxu1 %vm1271_vm5, %v981_v21 }
 0x167   :  { %984 = vmatprep.subr.bf16.mxu1 %v1054_v41 }
 0x16e   :  { %987 = vmatpush3.bf16.xpose.msk.msra.mxu1 %vm1271_vm5, %v985_v24 }
 0x175   :  { %892 = vmatmul.mubr.msk.f32.vlgmr.msra.gmra.mrb[4].mxu1 %vm472_vm4, %v449_v25 }
 0x203   :  { %v844_v28 = vpop.f32.mrb[0].mxu1 }
 0x204   :  { %v343_v29 = vadd.f32 %v844_v28, %v246_v26  ;;  %v337_v30 = vpop.f32.mrb[1].mxu1 }
 0x205   :  { %v338_v31 = vadd.f32 %v337_v30, %v241_v27 }
 0x206   :  { %1003 = vtanh.f32 %v343_v29 }
 0x207   :  { %1005 = vtanh.f32 %v338_v31  ;;  %v847_v33 = vpop.f32.mrb[2].mxu1 }
 0x208   :  { %v353_v35 = vadd.f32 %v847_v33, %v256_v32  ;;  %v347_v36 = vpop.f32.mrb[3].mxu1 }
 0x209   :  { %v348_v37 = vadd.f32 %v347_v36, %v251_v34 }
 0x20a   :  { %1007 = vtanh.f32 %v353_v35 }
 0x20b   :  { %1009 = vtanh.f32 %v348_v37 }
 0x210   :  { %v1004_v38 = vpop.eup %1003 }
 0x211   :  { %v1006_v39 = vpop.eup %1005 }
 0x212   :  { %v951_v40 = vpack.c.bf16 %v1004_v38, %v1006_v39 }
 0x214   :  { %v1008_v42 = vpop.eup %1007  ;;  %952 = vmatpush3.bf16.msra.mxu0 %v951_v40 }
 0x215   :  { %v1010_v43 = vpop.eup %1009  ;;  %953 = vmatprep.subr.bf16.mxu0 %v1054_v41  ;;  %v470_v41 = vpop.permute.xlu1 %469 }
 0x216   :  { %v954_v44 = vpack.c.bf16 %v1008_v42, %v1010_v43 }
 0x218   :  { %955 = vmatpush3.bf16.msra.mxu0 %v954_v44 }
 0x21b   :  { %857 = vmatmul.mubr.msk.f32.vlgmr.msra.gmra.mrb[4].mxu0 %vm258_vm2, %v360_v45 }
 0x248   :  { %v590_v46 = vpop.f32.mrb[4].mxu1 }
 0x249   :  { %v893_v47 = vpop.f32.mrb[5].mxu1  ;;  %v591_v56 = vadd.f32 %v590_v46, %v470_v41 }
 0x2ee   :  { %v436_v49 = vpop.f32.mrb[4].mxu0 }
 0x2ef   :  { %v437_v50 = vadd.f32 %v436_v49, %v365_v48  ;;  %v858_v51 = vpop.f32.mrb[5].mxu0 }
 0x2f1   :  { %v441_v52 = vand.u32 2147483647, %v437_v50  ;;  %v440_v59 = vmax.f32 %v437_v50, 0.0 }
 0x2f3   :  { %v442_v53 = vsub.f32 0.0, %v441_v52 }
 0x2f5   :  { %v443_v54 = vmul.f32 1.442695, %v442_v53 }
 0x2f7   :  { %1011 = vpow2.f32 %v443_v54 }
 0x301   :  { %v1012_v55 = vpop.eup %1011 }
 0x302   :  { %v445_v57 = vadd.f32 1.0, %v1012_v55 }
 0x304   :  { %1013 = vlog2.f32 %v445_v57 }
 0x305   :  { %1015 = vlog2.f32 %v591_v56 }
 0x30e   :  { %v1014_v58 = vpop.eup %1013 }
 0x30f   :  { %v447_v60 = vmul.f32 0.6931472, %v1014_v58  ;;  %v1016_v61 = vpop.eup %1015 }
 0x310   :  { %v595_v63 = vmul.f32 0.6931472, %v1016_v61 }
 0x311   :  { %v448_v62 = vadd.f32 %v447_v60, %v440_v59 }
 0x313   :  { %v596_v0 = vadd.f32 1.0, %v448_v62  ;;  %v631_v1 = vrot.slane %v448_v62, 4  ;;  %v745_v2 = vadd.f32 -1.0, %v448_v62 }
 0x315   :  { %v598_v3 = vadd.f32 1.0, %v596_v0  ;;  %v633_v4 = vadd.f32 %v631_v1, %v448_v62  ;;  %v1351_v5 = vmul.f32 %v745_v2, %v595_v63  ;;  %v597_v6 = vmul.f32 %v596_v0, %v448_v62 }
 0x317   :  { %v600_v7 = vadd.f32 1.0, %v598_v3  ;;  %v634_v8 = vadd.f32 1.0, %v633_v4  ;;  %v599_v11 = vmul.f32 %v598_v3, %v597_v6 }
 0x319   :  { %v602_v9 = vadd.f32 1.0, %v600_v7  ;;  %v636_v10 = vadd.f32 1.0, %v634_v8  ;;  %v635_v12 = vmul.f32 %v634_v8, %v633_v4  ;;  %v601_v17 = vmul.f32 %v600_v7, %v599_v11 }
 0x31b   :  { %v638_v13 = vadd.f32 1.0, %v636_v10  ;;  %v604_v14 = vadd.f32 1.0, %v602_v9  ;;  %v637_v18 = vmul.f32 %v636_v10, %v635_v12  ;;  %v603_v23 = vmul.f32 %v602_v9, %v601_v17 }
 0x31d   :  { %v606_v15 = vadd.f32 1.0, %v604_v14  ;;  %v640_v16 = vadd.f32 1.0, %v638_v13  ;;  %v639_v24 = vmul.f32 %v638_v13, %v637_v18  ;;  %v605_v27 = vmul.f32 %v604_v14, %v603_v23 }
 0x31f   :  { %v608_v19 = vadd.f32 1.0, %v606_v15  ;;  %v642_v20 = vadd.f32 1.0, %v640_v16  ;;  %v641_v28 = vmul.f32 %v640_v16, %v639_v24  ;;  %v607_v29 = vmul.f32 %v606_v15, %v605_v27 }
 0x321   :  { %v610_v21 = vadd.f32 1.0, %v608_v19  ;;  %v644_v22 = vadd.f32 1.0, %v642_v20  ;;  %v643_v30 = vmul.f32 %v642_v20, %v641_v28  ;;  %v609_v32 = vmul.f32 %v608_v19, %v607_v29 }
 0x323   :  { %v646_v25 = vadd.f32 1.0, %v644_v22  ;;  %1017 = vrcp.f32 %v610_v21  ;;  %v645_v33 = vmul.f32 %v644_v22, %v643_v30  ;;  %v743_v43 = vadd.f32 -0.5, %v610_v21 }
 0x324   :  { %1019 = vlog2.f32 %v610_v21 }
 0x325   :  { %v648_v26 = vadd.f32 1.0, %v646_v25  ;;  %v647_v39 = vmul.f32 %v646_v25, %v645_v33 }
 0x327   :  { %1021 = vrcp.f32 %v648_v26  ;;  %v744_v51 = vadd.f32 -0.5, %v648_v26 }
 0x328   :  { %1023 = vlog2.f32 %v648_v26 }
 0x329   :  { %1025 = vlog2.f32 %v609_v32 }
 0x32a   :  { %1027 = vlog2.f32 %v647_v39 }
 0x32d   :  { %v1018_v31 = vpop.eup %1017 }
 0x32e   :  { %v1020_v34 = vpop.eup %1019  ;;  %v614_v35 = vmul.f32 %v1018_v31, %v1018_v31 }
 0x32f   :  { %v624_v37 = vmul.f32 0.6931472, %v1020_v34 }
 0x330   :  { %v615_v36 = vmul.f32 -0.0005952381, %v614_v35 }
 0x331   :  { %v1022_v38 = vpop.eup %1021  ;;  %v625_v46 = vmul.f32 %v743_v43, %v624_v37 }
 0x332   :  { %v1024_v40 = vpop.eup %1023  ;;  %v616_v42 = vadd.f32 0.0007936508, %v615_v36  ;;  %v652_v44 = vmul.f32 %v1022_v38, %v1022_v38 }
 0x333   :  { %v662_v48 = vmul.f32 0.6931472, %v1024_v40  ;;  %v626_v53 = vsub.f32 %v625_v46, %v610_v21  ;;  %v1026_v57 = vpop.eup %1025 }
 0x334   :  { %v617_v45 = vmul.f32 %v616_v42, %v614_v35  ;;  %v653_v47 = vmul.f32 -0.0005952381, %v652_v44  ;;  %v612_v62 = vmul.f32 0.6931472, %v1026_v57  ;;  %v1028_v1 = vpop.eup %1027 }
 0x335   :  { %v663_v55 = vmul.f32 %v744_v51, %v662_v48  ;;  %v627_v59 = vadd.f32 0.9189385, %v626_v53  ;;  %v650_v6 = vmul.f32 0.6931472, %v1028_v1 }
 0x336   :  { %v618_v49 = vadd.f32 -0.0027777778, %v617_v45  ;;  %v654_v50 = vadd.f32 0.0007936508, %v653_v47 }
 0x337   :  { %v664_v61 = vsub.f32 %v663_v55, %v648_v26 }
 0x338   :  { %v619_v52 = vmul.f32 %v618_v49, %v614_v35  ;;  %v655_v54 = vmul.f32 %v654_v50, %v652_v44 }
 0x339   :  { %v665_v4 = vadd.f32 0.9189385, %v664_v61 }
 0x33a   :  { %v620_v41 = vadd.f32 0.083333336, %v619_v52  ;;  %v656_v56 = vadd.f32 -0.0027777778, %v655_v54 }
 0x33c   :  { %v621_v58 = vmul.f32 %v1018_v31, %v620_v41  ;;  %v657_v60 = vmul.f32 %v656_v56, %v652_v44 }
 0x33e   :  { %v628_v63 = vadd.f32 %v627_v59, %v621_v58  ;;  %v658_v0 = vadd.f32 0.083333336, %v657_v60 }
 0x340   :  { %v629_v2 = vsub.f32 %v628_v63, %v612_v62  ;;  %v659_v3 = vmul.f32 %v1022_v38, %v658_v0 }
 0x342   :  { %v666_v7 = vadd.f32 %v665_v4, %v659_v3  ;;  %v670_v8 = vsub.f32 %v1351_v5, %v629_v2 }
 0x344   :  { %v667_v9 = vsub.f32 %v666_v7, %v650_v6  ;;  %v671_v10 = vrot.slane %v670_v8, 4 }
 0x346   :  { %v672_v11 = vadd.f32 %v671_v10, %v670_v8  ;;  %v678_v12 = vsel %vm677_vm6, %v667_v9, 0.0 }
 0x347   :  { %v679_v13 = vrot.slane %v678_v12, 4 }
 0x348   :  { %v673_v14 = vrot.slane %v672_v11, 2 }
 0x349   :  { %v680_v15 = vadd.f32 %v679_v13, %v678_v12 }
 0x34a   :  { %v674_v16 = vadd.f32 %v673_v14, %v672_v11 }
 0x34b   :  { %v681_v17 = vrot.slane %v680_v15, 2 }
 0x34c   :  { %v675_v18 = vrot.slane %v674_v16, 1 }
 0x34d   :  { %v682_v19 = vadd.f32 %v681_v17, %v680_v15 }
 0x34e   :  { %v676_v21 = vadd.f32 %v675_v18, %v674_v16 }
 0x34f   :  { %v683_v20 = vrot.slane %v682_v19, 1 }
 0x351   :  { %v684_v22 = vadd.f32 %v683_v20, %v682_v19 }
 0x353   :  { %v685_v23 = vadd.f32 %v684_v22, %v676_v21 }
 0x355   :  { %686 = vst [vmem:[#allocation2] sm:$0x1] %v685_v23 }
 0x356   :  { %1040 = shalt.err (!%p1037_p4)
}
 0x357   :  { %s1041_s21 = scalar_lea.hbm %s1376_s10, 16 }
 0x358   :  { %p1042_p5 = scmp.ne.s32.totalorder %s1376_s10, %s1041_s21  ;;  %p1045_p6 = scmp.lt.u32.totalorder %s1041_s21, %s1376_s10 }
 0x35a   :  { %p1047_p7 = pnand %p1045_p6, %p1042_p5 }
 0x35c   :  { %1050 = shalt.err (!%p1047_p7)
}
 0x35d   :  { %696 = dma.vmem_to_hbm [thread:$0]  %s694_s17, 16, %s1376_s10, [#allocation3]  }
 0x35e   :  { %1051 = dma.done.wait [#allocation3], 16  }
 0x35f   :  { %1052 = vsyncadd [#allocation3], 4294967280 }
 0x360   :  { %700 = vsyncpa [#allocation3], 1 }

</bundles_post_ra>
